<compile_context>
chip_gen: v6e
topology: v6e:2x2x1
jax: 0.10.0
libtpu: 0.0.40
codegen_flags: <defaults>
</compile_context>

<pallas_src>
import functools

import jax
import jax.numpy as jnp
from jax.experimental import pallas as pl
from jax.experimental.pallas import tpu as pltpu


def _residual_block_kernel(x_ref, border_ref, w1_ref, w2_ref, o_ref,
                           stack_ref, *, H, W):
    # x_ref block: (1, C, H*W) lane-dense f32 slab; one image per grid step.
    C = x_ref.shape[1]
    HW = H * W
    mm_dtype = stack_ref.dtype

    # Reflection-border masks, hoisted and pre-broadcast once (reused by both
    # convs; avoids re-emitting the sublane broadcast inside the tap loop).
    col_first = jnp.broadcast_to(border_ref[0:1, :] != 0, (C, HW))
    col_last = jnp.broadcast_to(border_ref[1:2, :] != 0, (C, HW))
    row_first = jnp.broadcast_to(border_ref[2:3, :] != 0, (C, HW))
    row_last = jnp.broadcast_to(border_ref[3:4, :] != 0, (C, HW))

    def stack_taps(f):
        # All 9 taps of ReflectPad(1)+3x3 conv, built as lane rolls (XLU) plus
        # border selects (VPU) on the lane-dense slab -- no relayouts -- and
        # written into the (9C, HW) stacked slab consumed by a single matmul.
        # pltpu.roll follows jnp.roll semantics: out[j] = in[(j - shift) % n].
        r_p1 = pltpu.roll(f, 1, axis=1)              # value at col j-1
        r_m1 = pltpu.roll(f, HW - 1, axis=1)         # value at col j+1
        left = jnp.where(col_first, r_m1, r_p1)      # dx=-1 (reflect col 0 -> 1)
        right = jnp.where(col_last, r_p1, r_m1)      # dx=+1 (reflect W-1 -> W-2)
        for kx, mid in enumerate((left, f, right)):  # kx = 0,1,2  <-> dx = -1,0,+1
            u_p = pltpu.roll(mid, W, axis=1)         # row above
            u_m = pltpu.roll(mid, HW - W, axis=1)    # row below
            top = jnp.where(row_first, u_m, u_p)     # dy=-1 (reflect row 0 -> 1)
            bot = jnp.where(row_last, u_p, u_m)      # dy=+1 (reflect H-1 -> H-2)
            stack_ref[(0 * 3 + kx) * C:(0 * 3 + kx + 1) * C, :] = top.astype(mm_dtype)
            stack_ref[(1 * 3 + kx) * C:(1 * 3 + kx + 1) * C, :] = mid.astype(mm_dtype)
            stack_ref[(2 * 3 + kx) * C:(2 * 3 + kx + 1) * C, :] = bot.astype(mm_dtype)

    def conv3x3(w_ref):
        # Single (C, 9C) x (9C, HW) matmul, K deepened 9x, f32 accumulation.
        # Bias is omitted: it cancels exactly under affine=False InstanceNorm.
        return jnp.dot(w_ref[...], stack_ref[...],
                       preferred_element_type=jnp.float32)

    def instance_norm(f):
        # InstanceNorm2d defaults: affine=False, biased variance, eps=1e-5.
        # Single-pass stats: E[f] and E[f^2] reductions have no serial dep.
        mu = jnp.mean(f, axis=1, keepdims=True)
        ex2 = jnp.mean(f * f, axis=1, keepdims=True)
        var = ex2 - mu * mu
        return (f - mu) * jax.lax.rsqrt(var + 1e-5)

    stack_taps(x_ref[0])
    h = jnp.maximum(instance_norm(conv3x3(w1_ref)), 0.0)     # ReLU
    stack_taps(h)
    h = instance_norm(conv3x3(w2_ref))
    o_ref[0] = x_ref[0] + h        # residual from the input block (late re-read)


def residual_block(x, w1, b1, w2, b2, *, use_bf16_matmul=False):
    N, C, H, W = x.shape
    if H < 2 or W < 2:
        raise ValueError("ReflectionPad2d(1) requires H >= 2 and W >= 2")
    HW = H * W
    del b1, b2  # bias before affine=False InstanceNorm cancels exactly

    # Lane-dense activation slab for in/out specs (full-width vst on store).
    x_flat = x.reshape(N, C, HW)

    # Weights (Cout, Cin, 3, 3) -> (Cout, 9*Cin), column index = (ky*3+kx)*Cin + cin,
    # matching the tap order written into the stacked slab.
    mm_dtype = jnp.bfloat16 if use_bf16_matmul else jnp.float32
    w1_mat = jnp.transpose(w1, (0, 2, 3, 1)).reshape(C, 9 * C).astype(mm_dtype)
    w2_mat = jnp.transpose(w2, (0, 2, 3, 1)).reshape(C, 9 * C).astype(mm_dtype)

    # Reflection border masks on the flat H*W axis (precomputed here so the
    # kernel needs no integer div/rem): [col==0, col==W-1, row==0, row==H-1].
    j = jnp.arange(HW, dtype=jnp.int32)
    col = j % W
    row = j // W
    border = jnp.stack(
        [col == 0, col == W - 1, row == 0, row == H - 1]).astype(jnp.int32)

    # VMEM budget: exact working-set sum, capped with headroom below the
    # per-core capacity (v5e/v6e 128 MiB, v7x 64 MiB).
    act_bytes = C * HW * 4
    mm_bpe = 2 if use_bf16_matmul else 4
    needed = (2 * act_bytes                      # double-buffered input block
              + 2 * act_bytes                    # double-buffered output block
              + 2 * 4 * HW * 4                   # border masks (double-buffered)
              + 2 * 2 * (9 * C * C * mm_bpe)     # two weight mats (double-buffered)
              + 9 * C * HW * mm_bpe              # stacked tap scratch
              + 10 * act_bytes                   # live (C, HW) temporaries
              + (2 << 20))                       # Mosaic internal scratch margin
    try:
        vmem_cap = int(pltpu.get_tpu_info().vmem_capacity_bytes)
    except Exception:
        vmem_cap = 64 * 1024 * 1024              # conservative (v7x per-core)
    soft_cap = int(vmem_cap * 0.85)              # leave compiler/semaphore headroom
    vmem_limit = max(min(needed, soft_cap), min(32 * 1024 * 1024, soft_cap))
    # TODO(synk): if `needed` > soft_cap (large C*H*W), switch to H-band tiling
    # with a 1-row halo and two-pass InstanceNorm instead of raising the limit.

    kernel = functools.partial(_residual_block_kernel, H=H, W=W)

    out_flat = pl.pallas_call(
        kernel,
        out_shape=jax.ShapeDtypeStruct((N, C, HW), x.dtype),
        grid_spec=pltpu.PrefetchScalarGridSpec(
            num_scalar_prefetch=0,
            grid=(N,),
            in_specs=[
                pl.BlockSpec((1, C, HW), lambda n: (n, 0, 0)),
                pl.BlockSpec((4, HW), lambda n: (0, 0)),
                pl.BlockSpec((C, 9 * C), lambda n: (0, 0)),
                pl.BlockSpec((C, 9 * C), lambda n: (0, 0)),
            ],
            out_specs=pl.BlockSpec((1, C, HW), lambda n: (n, 0, 0)),
            scratch_shapes=[pltpu.VMEM((9 * C, HW), mm_dtype)],
        ),
        compiler_params=pltpu.CompilerParams(
            dimension_semantics=("parallel",),   # N=2 feeds both TCs on v7x
            vmem_limit_bytes=vmem_limit,
        ),
    )(x_flat, border, w1_mat, w2_mat)

    return out_flat.reshape(N, C, H, W)


def _reference(x, w1, b1, w2, b2):
    # Pure-JAX reference mirroring PyTorch semantics (biases kept here).
    def refpad(t):
        return jnp.pad(t, ((0, 0), (0, 0), (1, 1), (1, 1)), mode="reflect")

    def conv(t, w, b):
        y = jax.lax.conv_general_dilated(
            refpad(t), w, window_strides=(1, 1), padding="VALID",
            dimension_numbers=("NCHW", "OIHW", "NCHW"))
        return y + b[None, :, None, None]

    def inorm(t):
        mu = jnp.mean(t, axis=(2, 3), keepdims=True)
        var = jnp.mean((t - mu) ** 2, axis=(2, 3), keepdims=True)
        return (t - mu) * jax.lax.rsqrt(var + 1e-5)

    h = jnp.maximum(inorm(conv(x, w1, b1)), 0.0)
    h = inorm(conv(h, w2, b2))
    return x + h


if __name__ == "__main__":
    N, C, H, W = 2, 4, 16, 16
    key = jax.random.PRNGKey(0)
    kx, kw1, kb1, kw2, kb2 = jax.random.split(key, 5)

    x = jax.random.normal(kx, (N, C, H, W), dtype=jnp.float32)
    # Deterministic synthetic parameters (Conv2d(C, C, 3) with bias), roughly
    # matching PyTorch's default init scale (1/sqrt(fan_in)).
    scale = 1.0 / jnp.sqrt(jnp.float32(C * 3 * 3))
    w1 = jax.random.uniform(kw1, (C, C, 3, 3), jnp.float32, -scale, scale)
    b1 = jax.random.uniform(kb1, (C,), jnp.float32, -scale, scale)
    w2 = jax.random.uniform(kw2, (C, C, 3, 3), jnp.float32, -scale, scale)
    b2 = jax.random.uniform(kb2, (C,), jnp.float32, -scale, scale)

    out = residual_block(x, w1, b1, w2, b2)
    out = jax.block_until_ready(out)

    ref = _reference(x, w1, b1, w2, b2)
    assert out.shape == (N, C, H, W)
    err = float(jnp.max(jnp.abs(out - ref)))
    assert jnp.allclose(out, ref, rtol=1e-4, atol=1e-4), err

    print("KERNEL_OK")
</pallas_src>

<mosaic_0001>
module attributes {stable_mosaic.version = 11 : i64} {
  func.func @_residual_block_kernel(%arg0: i32, %arg1: memref<1x4x256xf32, #tpu.memory_space<vmem>>, %arg2: memref<4x256xi32, #tpu.memory_space<vmem>>, %arg3: memref<4x36xf32, #tpu.memory_space<vmem>>, %arg4: memref<4x36xf32, #tpu.memory_space<vmem>>, %arg5: memref<1x4x256xf32, #tpu.memory_space<vmem>>, %arg6: memref<36x256xf32, #tpu.memory_space<vmem>>) attributes {dimension_semantics = [#tpu.dimension_semantics<parallel>], iteration_bounds = array<i64: 2>, scalar_prefetch = 0 : i64, scratch_operands = 1 : i64, tpu.core_type = #tpu.core_type<tc>, window_params = [{transform_indices = @transform_0, window_bounds = array<i64: 1, 4, 256>}, {pipeline_mode = #tpu.pipeline_mode<synchronous>, transform_indices = @transform_1, window_bounds = array<i64: 4, 256>}, {pipeline_mode = #tpu.pipeline_mode<synchronous>, transform_indices = @transform_2, window_bounds = array<i64: 4, 36>}, {pipeline_mode = #tpu.pipeline_mode<synchronous>, transform_indices = @transform_3, window_bounds = array<i64: 4, 36>}, {transform_indices = @transform_4, window_bounds = array<i64: 1, 4, 256>}]} {
    %c0 = arith.constant 0 : index
    %c0_0 = arith.constant 0 : index
    %0 = vector.load %arg2[%c0, %c0_0] : memref<4x256xi32, #tpu.memory_space<vmem>>, vector<1x256xi32>
    %c0_i32 = arith.constant 0 : i32
    %1 = vector.broadcast %c0_i32 : i32 to vector<1x256xi32>
    %2 = arith.cmpi ne, %0, %1 : vector<1x256xi32>
    %3 = vector.shape_cast %2 : vector<1x256xi1> to vector<1x256xi1>
    %4 = vector.broadcast %3 : vector<1x256xi1> to vector<4x256xi1>
    %c1 = arith.constant 1 : index
    %c0_1 = arith.constant 0 : index
    %5 = vector.load %arg2[%c1, %c0_1] : memref<4x256xi32, #tpu.memory_space<vmem>>, vector<1x256xi32>
    %c0_i32_2 = arith.constant 0 : i32
    %6 = vector.broadcast %c0_i32_2 : i32 to vector<1x256xi32>
    %7 = arith.cmpi ne, %5, %6 : vector<1x256xi32>
    %8 = vector.shape_cast %7 : vector<1x256xi1> to vector<1x256xi1>
    %9 = vector.broadcast %8 : vector<1x256xi1> to vector<4x256xi1>
    %c2 = arith.constant 2 : index
    %c0_3 = arith.constant 0 : index
    %10 = vector.load %arg2[%c2, %c0_3] : memref<4x256xi32, #tpu.memory_space<vmem>>, vector<1x256xi32>
    %c0_i32_4 = arith.constant 0 : i32
    %11 = vector.broadcast %c0_i32_4 : i32 to vector<1x256xi32>
    %12 = arith.cmpi ne, %10, %11 : vector<1x256xi32>
    %13 = vector.shape_cast %12 : vector<1x256xi1> to vector<1x256xi1>
    %14 = vector.broadcast %13 : vector<1x256xi1> to vector<4x256xi1>
    %c3 = arith.constant 3 : index
    %c0_5 = arith.constant 0 : index
    %15 = vector.load %arg2[%c3, %c0_5] : memref<4x256xi32, #tpu.memory_space<vmem>>, vector<1x256xi32>
    %c0_i32_6 = arith.constant 0 : i32
    %16 = vector.broadcast %c0_i32_6 : i32 to vector<1x256xi32>
    %17 = arith.cmpi ne, %15, %16 : vector<1x256xi32>
    %18 = vector.shape_cast %17 : vector<1x256xi1> to vector<1x256xi1>
    %19 = vector.broadcast %18 : vector<1x256xi1> to vector<4x256xi1>
    %c0_7 = arith.constant 0 : index
    %c0_8 = arith.constant 0 : index
    %c0_9 = arith.constant 0 : index
    %20 = vector.load %arg1[%c0_7, %c0_8, %c0_9] : memref<1x4x256xf32, #tpu.memory_space<vmem>>, vector<1x4x256xf32>
    %21 = vector.shape_cast %20 : vector<1x4x256xf32> to vector<4x256xf32>
    %c1_i32 = arith.constant 1 : i32
    %22 = tpu.dynamic_rotate %21 by %c1_i32 dim 1 : vector<4x256xf32>, i32 -> vector<4x256xf32>
    %c255_i32 = arith.constant 255 : i32
    %23 = tpu.dynamic_rotate %21 by %c255_i32 dim 1 : vector<4x256xf32>, i32 -> vector<4x256xf32>
    %24 = arith.select %4, %23, %22 : vector<4x256xi1>, vector<4x256xf32>
    %25 = arith.select %9, %22, %23 : vector<4x256xi1>, vector<4x256xf32>
    %c16_i32 = arith.constant 16 : i32
    %26 = tpu.dynamic_rotate %24 by %c16_i32 dim 1 : vector<4x256xf32>, i32 -> vector<4x256xf32>
    %c240_i32 = arith.constant 240 : i32
    %27 = tpu.dynamic_rotate %24 by %c240_i32 dim 1 : vector<4x256xf32>, i32 -> vector<4x256xf32>
    %28 = arith.select %14, %27, %26 : vector<4x256xi1>, vector<4x256xf32>
    %29 = arith.select %19, %26, %27 : vector<4x256xi1>, vector<4x256xf32>
    %c0_10 = arith.constant 0 : index
    %c0_11 = arith.constant 0 : index
    %30 = vector.load %arg6[%c0_10, %c0_11] : memref<36x256xf32, #tpu.memory_space<vmem>>, vector<4x256xf32>
    tpu.vector_store %arg6[%c0_10, %c0_11], %28 {strides = array<i32>} : memref<36x256xf32, #tpu.memory_space<vmem>>, vector<4x256xf32>,
    %c12 = arith.constant 12 : index
    %c0_12 = arith.constant 0 : index
    %31 = vector.load %arg6[%c12, %c0_12] : memref<36x256xf32, #tpu.memory_space<vmem>>, vector<4x256xf32>
    tpu.vector_store %arg6[%c12, %c0_12], %24 {strides = array<i32>} : memref<36x256xf32, #tpu.memory_space<vmem>>, vector<4x256xf32>,
    %c24 = arith.constant 24 : index
    %c0_13 = arith.constant 0 : index
    %32 = vector.load %arg6[%c24, %c0_13] : memref<36x256xf32, #tpu.memory_space<vmem>>, vector<4x256xf32>
    tpu.vector_store %arg6[%c24, %c0_13], %29 {strides = array<i32>} : memref<36x256xf32, #tpu.memory_space<vmem>>, vector<4x256xf32>,
    %c16_i32_14 = arith.constant 16 : i32
    %33 = tpu.dynamic_rotate %21 by %c16_i32_14 dim 1 : vector<4x256xf32>, i32 -> vector<4x256xf32>
    %c240_i32_15 = arith.constant 240 : i32
    %34 = tpu.dynamic_rotate %21 by %c240_i32_15 dim 1 : vector<4x256xf32>, i32 -> vector<4x256xf32>
    %35 = arith.select %14, %34, %33 : vector<4x256xi1>, vector<4x256xf32>
    %36 = arith.select %19, %33, %34 : vector<4x256xi1>, vector<4x256xf32>
    %c4 = arith.constant 4 : index
    %c0_16 = arith.constant 0 : index
    %37 = vector.load %arg6[%c4, %c0_16] : memref<36x256xf32, #tpu.memory_space<vmem>>, vector<4x256xf32>
    tpu.vector_store %arg6[%c4, %c0_16], %35 {strides = array<i32>} : memref<36x256xf32, #tpu.memory_space<vmem>>, vector<4x256xf32>,
    %c16 = arith.constant 16 : index
    %c0_17 = arith.constant 0 : index
    %38 = vector.load %arg6[%c16, %c0_17] : memref<36x256xf32, #tpu.memory_space<vmem>>, vector<4x256xf32>
    tpu.vector_store %arg6[%c16, %c0_17], %21 {strides = array<i32>} : memref<36x256xf32, #tpu.memory_space<vmem>>, vector<4x256xf32>,
    %c28 = arith.constant 28 : index
    %c0_18 = arith.constant 0 : index
    %39 = vector.load %arg6[%c28, %c0_18] : memref<36x256xf32, #tpu.memory_space<vmem>>, vector<4x256xf32>
    tpu.vector_store %arg6[%c28, %c0_18], %36 {strides = array<i32>} : memref<36x256xf32, #tpu.memory_space<vmem>>, vector<4x256xf32>,
    %c16_i32_19 = arith.constant 16 : i32
    %40 = tpu.dynamic_rotate %25 by %c16_i32_19 dim 1 : vector<4x256xf32>, i32 -> vector<4x256xf32>
    %c240_i32_20 = arith.constant 240 : i32
    %41 = tpu.dynamic_rotate %25 by %c240_i32_20 dim 1 : vector<4x256xf32>, i32 -> vector<4x256xf32>
    %42 = arith.select %14, %41, %40 : vector<4x256xi1>, vector<4x256xf32>
    %43 = arith.select %19, %40, %41 : vector<4x256xi1>, vector<4x256xf32>
    %c8 = arith.constant 8 : index
    %c0_21 = arith.constant 0 : index
    %44 = vector.load %arg6[%c8, %c0_21] : memref<36x256xf32, #tpu.memory_space<vmem>>, vector<4x256xf32>
    tpu.vector_store %arg6[%c8, %c0_21], %42 {strides = array<i32>} : memref<36x256xf32, #tpu.memory_space<vmem>>, vector<4x256xf32>,
    %c20 = arith.constant 20 : index
    %c0_22 = arith.constant 0 : index
    %45 = vector.load %arg6[%c20, %c0_22] : memref<36x256xf32, #tpu.memory_space<vmem>>, vector<4x256xf32>
    tpu.vector_store %arg6[%c20, %c0_22], %25 {strides = array<i32>} : memref<36x256xf32, #tpu.memory_space<vmem>>, vector<4x256xf32>,
    %c32 = arith.constant 32 : index
    %c0_23 = arith.constant 0 : index
    %46 = vector.load %arg6[%c32, %c0_23] : memref<36x256xf32, #tpu.memory_space<vmem>>, vector<4x256xf32>
    tpu.vector_store %arg6[%c32, %c0_23], %43 {strides = array<i32>} : memref<36x256xf32, #tpu.memory_space<vmem>>, vector<4x256xf32>,
    %c0_24 = arith.constant 0 : index
    %c0_25 = arith.constant 0 : index
    %47 = vector.load %arg3[%c0_24, %c0_25] : memref<4x36xf32, #tpu.memory_space<vmem>>, vector<4x36xf32>
    %c0_26 = arith.constant 0 : index
    %c0_27 = arith.constant 0 : index
    %48 = vector.load %arg6[%c0_26, %c0_27] : memref<36x256xf32, #tpu.memory_space<vmem>>, vector<36x256xf32>
    %cst = arith.constant dense<0.000000e+00> : vector<4x256xf32>
    %49 = tpu.matmul %47, %48, %cst {dimension_numbers = #tpu.dot_dimension_numbers<[1], [0], [0], [1], [0, 0, 1, 1], [], []>} : vector<4x36xf32>, vector<36x256xf32>, vector<4x256xf32> -> vector<4x256xf32>
    %cst_28 = arith.constant dense<0.000000e+00> : vector<4xf32>
    %50 = vector.multi_reduction <add>, %49, %cst_28 [1] : vector<4x256xf32> to vector<4xf32>
    %51 = vector.shape_cast %50 : vector<4xf32> to vector<4x1xf32>
    %cst_29 = arith.constant 2.560000e+02 : f32
    %52 = vector.broadcast %cst_29 : f32 to vector<4x1xf32>
    %53 = arith.divf %51, %52 : vector<4x1xf32>
    %54 = arith.mulf %49, %49 : vector<4x256xf32>
    %cst_30 = arith.constant dense<0.000000e+00> : vector<4xf32>
    %55 = vector.multi_reduction <add>, %54, %cst_30 [1] : vector<4x256xf32> to vector<4xf32>
    %56 = vector.shape_cast %55 : vector<4xf32> to vector<4x1xf32>
    %cst_31 = arith.constant 2.560000e+02 : f32
    %57 = vector.broadcast %cst_31 : f32 to vector<4x1xf32>
    %58 = arith.divf %56, %57 : vector<4x1xf32>
    %59 = arith.mulf %53, %53 : vector<4x1xf32>
    %60 = arith.subf %58, %59 : vector<4x1xf32>
    %61 = vector.broadcast %53 : vector<4x1xf32> to vector<4x256xf32>
    %62 = arith.subf %49, %61 : vector<4x256xf32>
    %cst_32 = arith.constant 9.99999974E-6 : f32
    %63 = vector.broadcast %cst_32 : f32 to vector<4x1xf32>
    %64 = arith.addf %60, %63 : vector<4x1xf32>
    %65 = math.rsqrt %64 : vector<4x1xf32>
    %66 = vector.broadcast %65 : vector<4x1xf32> to vector<4x256xf32>
    %67 = arith.mulf %62, %66 : vector<4x256xf32>
    %cst_33 = arith.constant 0.000000e+00 : f32
    %68 = vector.broadcast %cst_33 : f32 to vector<4x256xf32>
    %69 = arith.maximumf %67, %68 : vector<4x256xf32>
    %c1_i32_34 = arith.constant 1 : i32
    %70 = tpu.dynamic_rotate %69 by %c1_i32_34 dim 1 : vector<4x256xf32>, i32 -> vector<4x256xf32>
    %c255_i32_35 = arith.constant 255 : i32
    %71 = tpu.dynamic_rotate %69 by %c255_i32_35 dim 1 : vector<4x256xf32>, i32 -> vector<4x256xf32>
    %72 = arith.select %4, %71, %70 : vector<4x256xi1>, vector<4x256xf32>
    %73 = arith.select %9, %70, %71 : vector<4x256xi1>, vector<4x256xf32>
    %c16_i32_36 = arith.constant 16 : i32
    %74 = tpu.dynamic_rotate %72 by %c16_i32_36 dim 1 : vector<4x256xf32>, i32 -> vector<4x256xf32>
    %c240_i32_37 = arith.constant 240 : i32
    %75 = tpu.dynamic_rotate %72 by %c240_i32_37 dim 1 : vector<4x256xf32>, i32 -> vector<4x256xf32>
    %76 = arith.select %14, %75, %74 : vector<4x256xi1>, vector<4x256xf32>
    %77 = arith.select %19, %74, %75 : vector<4x256xi1>, vector<4x256xf32>
    %c0_38 = arith.constant 0 : index
    %c0_39 = arith.constant 0 : index
    %78 = vector.load %arg6[%c0_38, %c0_39] : memref<36x256xf32, #tpu.memory_space<vmem>>, vector<4x256xf32>
    tpu.vector_store %arg6[%c0_38, %c0_39], %76 {strides = array<i32>} : memref<36x256xf32, #tpu.memory_space<vmem>>, vector<4x256xf32>,
    %c12_40 = arith.constant 12 : index
    %c0_41 = arith.constant 0 : index
    %79 = vector.load %arg6[%c12_40, %c0_41] : memref<36x256xf32, #tpu.memory_space<vmem>>, vector<4x256xf32>
    tpu.vector_store %arg6[%c12_40, %c0_41], %72 {strides = array<i32>} : memref<36x256xf32, #tpu.memory_space<vmem>>, vector<4x256xf32>,
    %c24_42 = arith.constant 24 : index
    %c0_43 = arith.constant 0 : index
    %80 = vector.load %arg6[%c24_42, %c0_43] : memref<36x256xf32, #tpu.memory_space<vmem>>, vector<4x256xf32>
    tpu.vector_store %arg6[%c24_42, %c0_43], %77 {strides = array<i32>} : memref<36x256xf32, #tpu.memory_space<vmem>>, vector<4x256xf32>,
    %c16_i32_44 = arith.constant 16 : i32
    %81 = tpu.dynamic_rotate %69 by %c16_i32_44 dim 1 : vector<4x256xf32>, i32 -> vector<4x256xf32>
    %c240_i32_45 = arith.constant 240 : i32
    %82 = tpu.dynamic_rotate %69 by %c240_i32_45 dim 1 : vector<4x256xf32>, i32 -> vector<4x256xf32>
    %83 = arith.select %14, %82, %81 : vector<4x256xi1>, vector<4x256xf32>
    %84 = arith.select %19, %81, %82 : vector<4x256xi1>, vector<4x256xf32>
    %c4_46 = arith.constant 4 : index
    %c0_47 = arith.constant 0 : index
    %85 = vector.load %arg6[%c4_46, %c0_47] : memref<36x256xf32, #tpu.memory_space<vmem>>, vector<4x256xf32>
    tpu.vector_store %arg6[%c4_46, %c0_47], %83 {strides = array<i32>} : memref<36x256xf32, #tpu.memory_space<vmem>>, vector<4x256xf32>,
    %c16_48 = arith.constant 16 : index
    %c0_49 = arith.constant 0 : index
    %86 = vector.load %arg6[%c16_48, %c0_49] : memref<36x256xf32, #tpu.memory_space<vmem>>, vector<4x256xf32>
    tpu.vector_store %arg6[%c16_48, %c0_49], %69 {strides = array<i32>} : memref<36x256xf32, #tpu.memory_space<vmem>>, vector<4x256xf32>,
    %c28_50 = arith.constant 28 : index
    %c0_51 = arith.constant 0 : index
    %87 = vector.load %arg6[%c28_50, %c0_51] : memref<36x256xf32, #tpu.memory_space<vmem>>, vector<4x256xf32>
    tpu.vector_store %arg6[%c28_50, %c0_51], %84 {strides = array<i32>} : memref<36x256xf32, #tpu.memory_space<vmem>>, vector<4x256xf32>,
    %c16_i32_52 = arith.constant 16 : i32
    %88 = tpu.dynamic_rotate %73 by %c16_i32_52 dim 1 : vector<4x256xf32>, i32 -> vector<4x256xf32>
    %c240_i32_53 = arith.constant 240 : i32
    %89 = tpu.dynamic_rotate %73 by %c240_i32_53 dim 1 : vector<4x256xf32>, i32 -> vector<4x256xf32>
    %90 = arith.select %14, %89, %88 : vector<4x256xi1>, vector<4x256xf32>
    %91 = arith.select %19, %88, %89 : vector<4x256xi1>, vector<4x256xf32>
    %c8_54 = arith.constant 8 : index
    %c0_55 = arith.constant 0 : index
    %92 = vector.load %arg6[%c8_54, %c0_55] : memref<36x256xf32, #tpu.memory_space<vmem>>, vector<4x256xf32>
    tpu.vector_store %arg6[%c8_54, %c0_55], %90 {strides = array<i32>} : memref<36x256xf32, #tpu.memory_space<vmem>>, vector<4x256xf32>,
    %c20_56 = arith.constant 20 : index
    %c0_57 = arith.constant 0 : index
    %93 = vector.load %arg6[%c20_56, %c0_57] : memref<36x256xf32, #tpu.memory_space<vmem>>, vector<4x256xf32>
    tpu.vector_store %arg6[%c20_56, %c0_57], %73 {strides = array<i32>} : memref<36x256xf32, #tpu.memory_space<vmem>>, vector<4x256xf32>,
    %c32_58 = arith.constant 32 : index
    %c0_59 = arith.constant 0 : index
    %94 = vector.load %arg6[%c32_58, %c0_59] : memref<36x256xf32, #tpu.memory_space<vmem>>, vector<4x256xf32>
    tpu.vector_store %arg6[%c32_58, %c0_59], %91 {strides = array<i32>} : memref<36x256xf32, #tpu.memory_space<vmem>>, vector<4x256xf32>,
    %c0_60 = arith.constant 0 : index
    %c0_61 = arith.constant 0 : index
    %95 = vector.load %arg4[%c0_60, %c0_61] : memref<4x36xf32, #tpu.memory_space<vmem>>, vector<4x36xf32>
    %c0_62 = arith.constant 0 : index
    %c0_63 = arith.constant 0 : index
    %96 = vector.load %arg6[%c0_62, %c0_63] : memref<36x256xf32, #tpu.memory_space<vmem>>, vector<36x256xf32>
    %cst_64 = arith.constant dense<0.000000e+00> : vector<4x256xf32>
    %97 = tpu.matmul %95, %96, %cst_64 {dimension_numbers = #tpu.dot_dimension_numbers<[1], [0], [0], [1], [0, 0, 1, 1], [], []>} : vector<4x36xf32>, vector<36x256xf32>, vector<4x256xf32> -> vector<4x256xf32>
    %cst_65 = arith.constant dense<0.000000e+00> : vector<4xf32>
    %98 = vector.multi_reduction <add>, %97, %cst_65 [1] : vector<4x256xf32> to vector<4xf32>
    %99 = vector.shape_cast %98 : vector<4xf32> to vector<4x1xf32>
    %cst_66 = arith.constant 2.560000e+02 : f32
    %100 = vector.broadcast %cst_66 : f32 to vector<4x1xf32>
    %101 = arith.divf %99, %100 : vector<4x1xf32>
    %102 = arith.mulf %97, %97 : vector<4x256xf32>
    %cst_67 = arith.constant dense<0.000000e+00> : vector<4xf32>
    %103 = vector.multi_reduction <add>, %102, %cst_67 [1] : vector<4x256xf32> to vector<4xf32>
    %104 = vector.shape_cast %103 : vector<4xf32> to vector<4x1xf32>
    %cst_68 = arith.constant 2.560000e+02 : f32
    %105 = vector.broadcast %cst_68 : f32 to vector<4x1xf32>
    %106 = arith.divf %104, %105 : vector<4x1xf32>
    %107 = arith.mulf %101, %101 : vector<4x1xf32>
    %108 = arith.subf %106, %107 : vector<4x1xf32>
    %109 = vector.broadcast %101 : vector<4x1xf32> to vector<4x256xf32>
    %110 = arith.subf %97, %109 : vector<4x256xf32>
    %cst_69 = arith.constant 9.99999974E-6 : f32
    %111 = vector.broadcast %cst_69 : f32 to vector<4x1xf32>
    %112 = arith.addf %108, %111 : vector<4x1xf32>
    %113 = math.rsqrt %112 : vector<4x1xf32>
    %114 = vector.broadcast %113 : vector<4x1xf32> to vector<4x256xf32>
    %115 = arith.mulf %110, %114 : vector<4x256xf32>
    %c0_70 = arith.constant 0 : index
    %c0_71 = arith.constant 0 : index
    %c0_72 = arith.constant 0 : index
    %116 = vector.load %arg1[%c0_70, %c0_71, %c0_72] : memref<1x4x256xf32, #tpu.memory_space<vmem>>, vector<1x4x256xf32>
    %117 = vector.shape_cast %116 : vector<1x4x256xf32> to vector<4x256xf32>
    %118 = arith.addf %117, %115 : vector<4x256xf32>
    %c0_73 = arith.constant 0 : index
    %c0_74 = arith.constant 0 : index
    %c0_75 = arith.constant 0 : index
    %119 = vector.load %arg5[%c0_73, %c0_74, %c0_75] : memref<1x4x256xf32, #tpu.memory_space<vmem>>, vector<1x4x256xf32>
    %120 = vector.shape_cast %119 : vector<1x4x256xf32> to vector<4x256xf32>
    %121 = vector.shape_cast %118 : vector<4x256xf32> to vector<1x4x256xf32>
    tpu.vector_store %arg5[%c0_73, %c0_74, %c0_75], %121 {strides = array<i32>} : memref<1x4x256xf32, #tpu.memory_space<vmem>>, vector<1x4x256xf32>,
    return
  }
  func.func @transform_0(%arg0: i32) -> (i32, i32, i32) {
    %c0_i32 = arith.constant 0 : i32
    %c0_i32_0 = arith.constant 0 : i32
    %c0_i32_1 = arith.constant 0 : i32
    return %arg0, %c0_i32, %c0_i32_0 : i32, i32, i32
  }
  func.func @transform_1(%arg0: i32) -> (i32, i32) {
    %c0_i32 = arith.constant 0 : i32
    %c0_i32_0 = arith.constant 0 : i32
    %c0_i32_1 = arith.constant 0 : i32
    return %c0_i32, %c0_i32_0 : i32, i32
  }
  func.func @transform_2(%arg0: i32) -> (i32, i32) {
    %c0_i32 = arith.constant 0 : i32
    %c0_i32_0 = arith.constant 0 : i32
    %c0_i32_1 = arith.constant 0 : i32
    return %c0_i32, %c0_i32_0 : i32, i32
  }
  func.func @transform_3(%arg0: i32) -> (i32, i32) {
    %c0_i32 = arith.constant 0 : i32
    %c0_i32_0 = arith.constant 0 : i32
    %c0_i32_1 = arith.constant 0 : i32
    return %c0_i32, %c0_i32_0 : i32, i32
  }
  func.func @transform_4(%arg0: i32) -> (i32, i32, i32) {
    %c0_i32 = arith.constant 0 : i32
    %c0_i32_0 = arith.constant 0 : i32
    %c0_i32_1 = arith.constant 0 : i32
    return %arg0, %c0_i32, %c0_i32_0 : i32, i32, i32
  }
}

</mosaic_0001>

<bundles_post_ra>
// kernel: tpu_custom_call.1
= control target key start
LH: loop header
LB: loop body
LE: loop exit
PB: predicated region body
PF: predicated region fallthrough
CT: control target
= control target key end

     0   :  { %9 = vsyncpa [#allocation4], 0  ;;  %s1541_s0 = inlined_call_operand.hbm [shape: f32[2,4,256], index: 0, kind: input, shape index: {}]   ;;  %s1542_s1 = inlined_call_operand.hbm [shape: s32[4,256], index: 1, kind: input, shape index: {}]   ;;  %s1543_s2 = inlined_call_operand.hbm [shape: f32[4,36], index: 2, kind: input, shape index: {}]   ;;  %s1544_s3 = inlined_call_operand.vmem [shape: f32[4,36], index: 3, kind: input, shape index: {}]   ;;  %s1545_s4 = inlined_call_operand.hbm [shape: f32[2,4,256], index: 4, kind: output, shape index: {}]  }
   0x1   :  { %11 = vsyncpa [#allocation4 + $0x1], 0 }
   0x2   :  { %12 = vsyncpa [#allocation7], 0 }
   0x3   :  { %13 = vsyncpa [#allocation5], 0 }
   0x4   :  { %15 = vsyncpa [#allocation5 + $0x1], 0  ;;  %s1147_s15 = smov 0   ;;  %s1149_s16 = smov 0  }
   0x5   :  { %s1151_s17 = smov 0   ;;  %s1153_s18 = smov 0  }
   0x6 LB: > { %s1168_s19 = sadd.s32 4294967295, %s1110_s18   ;;  %s858_s20 = sadd.s32 4294967294, %s1110_s18   ;;  %s1110_s18 = sphi %s1153_s18, %s1583_s18   ;;  %s1106_s17 = sphi %s1151_s17, %s1582_s17   ;;  %s1102_s16 = sphi %s1149_s16, %s1581_s16   ;;  %s1098_s15 = sphi %s1147_s15, %s1580_s15  }
   0x7   : > { %p41_p0 = scmp.ne.s32.totalorder %s1102_s16, %s1098_s15  ;;  %p1546_p1 = scmp.eq.s32.totalorder %s1168_s19, 0 }
   0x8   : > { %p134_p3 = scmp.eq.s32.totalorder %s858_s20, 1  ;;  %p859_p5 = scmp.ge.s32.totalorder %s1110_s18, 1 }
   0x9   : > { %p1177_p4 = por %p1546_p1, %p41_p0  ;;  %p141_p7 = scmp.lt.s32.totalorder %s1110_s18, 3 }
   0xa   : > { %p1182_p6 = por %p134_p3, %p41_p0  ;;  %s1112_s24 = smov [#allocation6]  }
   0xb   : > { %s1550_s21 = scalar_select %p1177_p4, 1, 0 }
   0xc   : > { %s1551_s22 = scalar_select %p1182_p6, 1, 0 }
   0xd   : > { %p1187_p8 = pnand %p859_p5, %p141_p7  ;;  %s154_s25 = sshll.u32 %s1112_s24, 4  ;;  %s155_s25 = int_to_ptr.vmem [resolvable:$true] %s154_s25 }
   0xe   : > { %s1113_s26 = smov [#allocation8]   ;;  %s1201_s29 = sadd.s32 1, %s1110_s18  }
   0xf   : > { %s1552_s23 = scalar_select %p1187_p8, 1, 0 }
  0x10   : > { %p896_p10 = pneg %p1187_p8  ;;  %s165_s27 = sshll.u32 %s1113_s26, 4  ;;  %s166_s27 = int_to_ptr.vmem [resolvable:$true] %s165_s27 }
  0x11   : > { %s25_s30 = ssub.s32 %s1110_s18, %s1201_s29  ;;  %s973_s5 = scalar_lea.vmem %s155_s25, 128 }
  0x12   : > { %p1196_p11 = pnand %p896_p10, %p1546_p1  ;;  %p974_p13 = scmp.ne.s32.totalorder %s155_s25, %s973_s5 }
  0x13   : > { %p981_p5 = scmp.lt.s32.totalorder %s155_s25, %s155_s25  ;;  %p982_p7 = scmp.lt.s32.totalorder %s973_s5, %s973_s5 }
  0x14   : > { %p964_p12 = pneg %p1196_p11 }
  0x15   : > { %p983_p10 = por %p982_p7, %p981_p5 }
  0x16   : > { %p976_p0 = pnand %p974_p13, %p964_p12 }
  0x18   : > { %p977_p3 = pneg %p976_p0 }
  0x1a   : > { %p984_p9 = pnand %p983_p10, %p977_p3 }
  0x1c   : > { %987 = shalt.err (!%p984_p9)
}
  0x1d   : > { %899 = dma.hbm_to_vmem [thread:$0]  (!%p1196_p11), %s1542_s1, 128, %s155_s25, [#allocation7]  }
  0x1e   : > { %s999_s8 = scalar_lea.vmem %s166_s27, 64  ;;  %p1007_p13 = scmp.lt.s32.totalorder %s166_s27, %s166_s27 }
  0x1f   : > { %p1000_p1 = scmp.ne.s32.totalorder %s166_s27, %s999_s8  ;;  %p1008_p0 = scmp.lt.s32.totalorder %s999_s8, %s999_s8 }
  0x21   : > { %p1002_p2 = pnand %p1000_p1, %p964_p12  ;;  %p1009_p4 = por %p1008_p0, %p1007_p13 }
  0x23   : > { %p1003_p6 = pneg %p1002_p2 }
  0x25   : > { %p1010_p8 = pnand %p1009_p4, %p1003_p6 }
  0x27   : > { %1013 = shalt.err (!%p1010_p8)
}
  0x28   : > { %902 = dma.hbm_to_vmem [thread:$0]  (!%p1196_p11), %s1543_s2, 64, %s166_s27, [#allocation7]  }
  0x29   : > { %p26_p1 = scmp.eq.s32.totalorder %s25_s30, 0  ;;  %s28_s11 = sadd.s32 1, %s1106_s17 }
  0x2a   : > { %p35_p2 = scmp.ne.s32.totalorder %s1106_s17, %s1102_s16  ;;  %p36_p4 = scmp.eq.s32.totalorder %s1110_s18, 0 }
  0x2b   : > { %s1228_s12 = scalar_select %p26_p1, %s1106_s17, %s28_s11  }
  0x2c   : > { %p37_p6 = por %p36_p4, %p35_p2  ;;  %p1554_p8 = scmp.eq.s32.totalorder %s1168_s19, 1 }
  0x2d   : > { %p913_p12 = scmp.lt.s32.totalorder %s1110_s18, 2  ;;  %s179_s14 = sand.u32 1, %s1106_s17  }
  0x2e   : > { %p1232_p9 = por %p1554_p8, %p35_p2  ;;  %s863_s20 = sshll.u32 %s179_s14, 3 }
  0x2f   : > { %s882_s24 = sshll.u32 %s1110_s18, 7  ;;  %s183_s28 = scalar_lea.vmem [#allocation3], %s863_s20 }
  0x30   : > { %s1555_s13 = scalar_select %p1232_p9, 1, 0 }
  0x31   : > { %s1242_s27 = scalar_lea.hbm %s1541_s0, %s882_s24  ;;  %s191_s30 = sshll.u32 %s183_s28, 4  ;;  %s192_s30 = int_to_ptr.vmem [resolvable:$true] %s191_s30 }
  0x32   : > { %p1244_p11 = pnand %p913_p12, %p37_p6  ;;  %s180_s6 = scalar_lea.sflag [#allocation4], %s179_s14 }
  0x33   : > { %s1014_s7 = scalar_lea.hbm %s1242_s27, 128  ;;  %s1019_s10 = scalar_lea.hbm %s1541_s0, 256 }
  0x34   : > { %p1015_p3 = scmp.ne.s32.totalorder %s1242_s27, %s1014_s7  ;;  %p1016_p5 = pneg %p1244_p11 }
  0x35   : > { %p1020_p13 = scmp.lt.s32.totalorder %s1242_s27, %s1541_s0  ;;  %p1021_p0 = scmp.lt.s32.totalorder %s1019_s10, %s1014_s7 }
  0x36   : > { %p1017_p7 = pnand %p1016_p5, %p1015_p3 }
  0x37   : > { %p1022_p1 = por %p1021_p0, %p1020_p13 }
  0x38   : > { %p1018_p10 = pneg %p1017_p7 }
  0x3a   : > { %p1023_p2 = pnand %p1022_p1, %p1018_p10 }
  0x3c   : > { %1026 = shalt.err (!%p1023_p2)
}
  0x3d   : > { %s1027_s24 = scalar_lea.vmem %s192_s30, 128  ;;  %s1114_s14 = smov [#allocation3]  }
  0x3e   : > { %p1028_p4 = scmp.ne.s32.totalorder %s192_s30, %s1027_s24  ;;  %s1032_s25 = sshll.u32 %s1114_s14, 4  ;;  %s1033_s25 = int_to_ptr.vmem [resolvable:$false] %s1032_s25 }
  0x3f   : > { %s1034_s26 = scalar_lea.vmem %s1033_s25, 256  ;;  %p1035_p12 = scmp.lt.s32.totalorder %s192_s30, %s1033_s25 }
  0x40   : > { %p1030_p6 = pnand %p1028_p4, %p1016_p5  ;;  %p1036_p3 = scmp.lt.s32.totalorder %s1034_s26, %s1027_s24 }
  0x42   : > { %p1031_p8 = pneg %p1030_p6  ;;  %p1037_p7 = por %p1036_p3, %p1035_p12 }
  0x44   : > { %p1038_p9 = pnand %p1037_p7, %p1031_p8 }
  0x46   : > { %1041 = shalt.err (!%p1038_p9)
}
  0x47   : > { %906 = dma.hbm_to_vmem [thread:$0]  (!%p1244_p11), %s1242_s27, 128, %s192_s30, %s180_s6  }
  0x48   : > { %p1557_p10 = scmp.ne.s32.totalorder %s1552_s23, 0 }
  0x49   : > { %s1265_s28 = sand.u32 (!%p1557_p10), 1, %s1102_s16   ;;  %p1558_p5 = scmp.ne.s32.totalorder (!%p1557_p10), %s1550_s21, 0 }
  0x4a   : > { %200 = sbr.rel (%p1557_p10) target bundleno = 1359 (0x54f), region = 36  ;;  %s867_s7 = sshll.u32 (!%p1557_p10), %s1265_s28, 3 }
  0x4b   : > { %s203_s8 = scalar_lea.sflag (!%p1557_p10), [#allocation4], %s1265_s28  ;;  %s206_s9 = scalar_lea.vmem (!%p1557_p10), [#allocation3], %s867_s7 }
  0x4f   : > { %1085 = dma.done.wait (%p1558_p5), %s203_s8, 128  }
  0x50   : > { %1087 = vsyncadd (%p1558_p5), %s203_s8, 4294967168  ;;  %p1559_p9 = scmp.eq.s32.totalorder %s1168_s19, 0 }
  0x52   : > { %1089 = dma.done.wait (%p1559_p9), [#allocation7], 192   ;;  %p1560_p11 = pmov %p1559_p9 }
  0x53   : > { %v1279_v0 = vld [vmem:[%s206_s9] sm:$0xff]  ;;  %s1115_s23 = smov 127   ;;  %s1116_s27 = smov 1   ;;  %v242_v2 = vlaneseq  ;;  %v253_v4 = vld [vmem:[#allocation6 + $0x1] ss:$4 sm:$0x3] }
  0x54   : > { %1091 = vsyncadd (%p1560_p11), [#allocation7], 4294967104  ;;  %307 = vrot.lane.b32.xlu1 %v1279_v0, %s1115_s23  ;;  %372 = vst [vmem:[#allocation2 + $0x8] sm:$0xf] %v1279_v0  ;;  %298 = vrot.lane.b32.xlu0 %v1279_v0, %s1116_s27  ;;  %v296_v1 = vcombine.high %v1279_v0, %v1279_v0  ;;  %s1117_s21 = smov 16   ;;  %s1118_s30 = smov 112  }
  0x55   : > { %v243_v3 = vshrl.u32 %v242_v2, 7  ;;  %v239_v5 = vld [vmem:[#allocation6] ss:$4 sm:$0x3]  ;;  %vm254_vm0 = vcmp.ne.s32.totalorder %v253_v4, 0  ;;  %v1119_v10 = vmov 0  }
  0x56   : > { %373 = vst [vmem:[#allocation2 + $0x30] sm:$0xf] %v296_v1  ;;  %vm240_vm1 = vcmp.ne.s32.totalorder %v239_v5, 0  ;;  %v267_v8 = vld [vmem:[#allocation6 + $0x2] ss:$4 sm:$0x3] }
  0x57   : > { %v248_v6 = vsub.s32 1, %v243_v3  ;;  %v244_v7 = vsub.s32 0, %v243_v3  ;;  %v281_v9 = vld [vmem:[#allocation6 + $0x3] ss:$4 sm:$0x3]  ;;  %v255_v11 = vsel %vm254_vm0, 1, %v1119_v10 }
  0x58   : > { %309 = vrot.lane.b32.xlu1 %v296_v1, %s1115_s23  ;;  %300 = vrot.lane.b32.xlu0 %v296_v1, %s1116_s27  ;;  %v241_v12 = vsel %vm240_vm1, 1, %v1119_v10  ;;  %v1296_v13 = vand.u32 127, %v242_v2  ;;  %vm268_vm2 = vcmp.ne.s32.totalorder %v267_v8, 0  ;;  %vm282_vm3 = vcmp.ne.s32.totalorder %v281_v9, 0  ;;  %s883_s10 = sshll.u32 %s1168_s19, 7  ;;  %s238_s11 = scalar_lea.vmem [#allocation9], %s867_s7 }
  0x59   : > { %v263_v14 = vrot.slane %v255_v11, %v248_v6  ;;  %v259_v15 = vrot.slane %v255_v11, %v244_v7  ;;  %v249_v16 = vrot.slane %v241_v12, %v248_v6  ;;  %v245_v17 = vrot.slane %v241_v12, %v244_v7  ;;  %s769_s20 = sshll.u32 %s238_s11, 4  ;;  %s767_s25 = scalar_lea.hbm %s1545_s4, %s883_s10  ;;  %s770_s20 = int_to_ptr.vmem [resolvable:$true] %s769_s20 }
  0x5a   : > { %v269_v20 = vsel %vm268_vm2, 1, %v1119_v10  ;;  %v283_v21 = vsel %vm282_vm3, 1, %v1119_v10  ;;  %vm311_vm4 = vcmp.lt.s32.totalorder %v1296_v13, 127  ;;  %vm304_vm5 = vcmp.lt.s32.totalorder %v1296_v13, 1  ;;  %s755_s26 = scalar_lea.sflag [#allocation5], %s1265_s28  ;;  %s1042_s8 = scalar_lea.vmem %s770_s20, 128 }
  0x5b   : > { %vm1300_vm6 = vcmp.eq.s32.totalorder %v263_v14, 1  ;;  %vm1304_vm7 = vcmp.eq.s32.totalorder %v259_v15, 1  ;;  %vm1308_vm8 = vcmp.eq.s32.totalorder %v249_v16, 1  ;;  %vm1312_vm9 = vcmp.eq.s32.totalorder %v245_v17, 1  ;;  %p1043_p13 = scmp.ne.s32.totalorder %s770_s20, %s1042_s8  ;;  %p1577_p0 = scmp.ne.s32.totalorder %s1555_s13, 0 }
  0x5c   : > { %350 = vrot.lane.b32.xlu1 %v296_v1, %s1117_s21  ;;  %348 = vrot.lane.b32.xlu0 %v1279_v0, %s1117_s21  ;;  %v273_v28 = vrot.slane %v269_v20, %v244_v7  ;;  %v277_v29 = vrot.slane %v269_v20, %v248_v6  ;;  %v287_v30 = vrot.slane %v283_v21, %v244_v7  ;;  %vm322_vm10 = vcmp.lt.s32.totalorder %v1296_v13, 16  ;;  %s1121_s9 = smov [#allocation9]  }
  0x5d   : > { %v291_v31 = vrot.slane %v283_v21, %v248_v6  ;;  %vm329_vm11 = vcmp.lt.s32.totalorder %v1296_v13, 112  ;;  %vm425_vm0 = vcmask 1043456   ;;  %vm421_vm1 = vcmask 293888   ;;  %p1044_p1 = pnand %p1043_p13, %p1577_p0  ;;  %s1046_s19 = sshll.u32 %s1121_s9, 4  ;;  %s1047_s19 = int_to_ptr.vmem [resolvable:$false] %s1046_s19 }
  0x5e   : > { %vm1336_vm12 = vcmp.eq.s32.totalorder %v273_v28, 1  ;;  %vm1340_vm13 = vcmp.eq.s32.totalorder %v277_v29, 1  ;;  %vm1350_vm14 = vcmp.eq.s32.totalorder %v287_v30, 1  ;;  %s1048_s7 = scalar_lea.vmem %s1047_s19, 256  ;;  %p1049_p4 = scmp.lt.s32.totalorder %s770_s20, %s1047_s19 }
  0x5f   : > { %vm1354_vm15 = vcmp.eq.s32.totalorder %v291_v31, 1  ;;  %p1045_p2 = pneg %p1044_p1  ;;  %p1050_p6 = scmp.lt.s32.totalorder %s1048_s7, %s1042_s8 }
  0x60   : > { %356 = vrot.lane.b32.xlu1 %v296_v1, %s1118_s30  ;;  %354 = vrot.lane.b32.xlu0 %v1279_v0, %s1118_s30  ;;  %v1120_v1 = vmov 0.0  }
  0x61   : > { %496 = vmatprep.mubr.f32.mxu0 %v1120_v1  ;;  %718 = vmatprep.mubr.f32.mxu1 %v1120_v1  ;;  %p1051_p8 = por %p1050_p6, %p1049_p4 }
  0x63   : > { %p1052_p12 = pnand %p1051_p8, %p1045_p2 }
  0xc6   : > { %v308_v18 = vpop.permute.xlu1 %307  ;;  %v299_v19 = vpop.permute.xlu0 %298 }
  0xca   : > { %v310_v26 = vpop.permute.xlu1 %309  ;;  %v301_v27 = vpop.permute.xlu0 %300 }
  0xcb   : > { %v312_v32 = vsel %vm311_vm4, %v308_v18, %v310_v26  ;;  %v313_v33 = vsel %vm311_vm4, %v310_v26, %v308_v18  ;;  %v305_v34 = vsel %vm304_vm5, %v299_v19, %v301_v27  ;;  %v306_v35 = vsel %vm304_vm5, %v301_v27, %v299_v19 }
  0xcc   : > { %v317_v36 = vsel %vm1300_vm6, %v305_v34, %v313_v33  ;;  %v316_v37 = vsel %vm1304_vm7, %v306_v35, %v312_v32  ;;  %v315_v38 = vsel %vm1308_vm8, %v313_v33, %v305_v34  ;;  %v314_v39 = vsel %vm1312_vm9, %v312_v32, %v306_v35 }
  0xcd   : > { %384 = vrot.lane.b32.xlu1 %v317_v36, %s1117_s21  ;;  %v403_v40 = vrot.slane %v317_v36, 4  ;;  %382 = vrot.lane.b32.xlu0 %v316_v37, %s1117_s21  ;;  %v402_v41 = vrot.slane %v316_v37, 4  ;;  %v341_v42 = vrot.slane %v315_v38, 4  ;;  %v340_v43 = vrot.slane %v314_v39, 4 }
  0xce   : > { %v351_v44 = vpop.permute.xlu1 %350  ;;  %v349_v45 = vpop.permute.xlu0 %348 }
  0xcf   : > { %407 = vst [vmem:[#allocation2 + $0x30] sm:$0xf0] %v403_v40  ;;  %406 = vst [vmem:[#allocation2 + $0x8] sm:$0xf0] %v402_v41  ;;  %v352_v48 = vsel %vm322_vm10, %v349_v45, %v351_v44  ;;  %v353_v49 = vsel %vm322_vm10, %v351_v44, %v349_v45  ;;  %v410_v40 = vld [vmem:[#allocation8] sm:$0xf] }
  0xd0   : > { %345 = vst [vmem:[#allocation2 + $0x10] sm:$0xf0] %v341_v42  ;;  %344 = vst [vmem:[#allocation2 + $0x18] sm:$0xf0] %v340_v43 }
  0xd1   : > { %390 = vrot.lane.b32.xlu1 %v317_v36, %s1118_s30  ;;  %388 = vrot.lane.b32.xlu0 %v316_v37, %s1118_s30 }
  0xd2   : > { %v357_v52 = vpop.permute.xlu1 %356  ;;  %v355_v53 = vpop.permute.xlu0 %354 }
  0xd3   : > { %v358_v54 = vsel %vm329_vm11, %v355_v53, %v357_v52  ;;  %v359_v55 = vsel %vm329_vm11, %v357_v52, %v355_v53 }
  0xd4   : > { %v360_v56 = vsel %vm1336_vm12, %v358_v54, %v353_v49  ;;  %v361_v57 = vsel %vm1340_vm13, %v359_v55, %v352_v48  ;;  %v362_v58 = vsel %vm1350_vm14, %v353_v49, %v358_v54  ;;  %v363_v59 = vsel %vm1354_vm15, %v352_v48, %v359_v55 }
  0xd5   : > { %320 = vrot.lane.b32.xlu1 %v315_v38, %s1117_s21  ;;  %318 = vrot.lane.b32.xlu0 %v314_v39, %s1117_s21  ;;  %v366_v60 = vrot.slane %v360_v56, 4  ;;  %v367_v61 = vrot.slane %v361_v57, 4  ;;  %v376_v62 = vrot.slane %v362_v58, 4  ;;  %v377_v63 = vrot.slane %v363_v59, 4 }
  0xd6   : > { %v416_v35 = vld [vmem:[#allocation2 + $0x30] sm:$0xff]  ;;  %v415_v36 = vld [vmem:[#allocation2 + $0x8] sm:$0xff] }
  0xd7   : > { %370 = vst [vmem:[#allocation2 + $0x20] sm:$0xf0] %v366_v60  ;;  %371 = vst [vmem:[#allocation2] sm:$0xf0] %v367_v61 }
  0xd8   : > { %380 = vst [vmem:[#allocation2 + $0x48] sm:$0xf0] %v376_v62  ;;  %381 = vst [vmem:[#allocation2 + $0x38] sm:$0xf0] %v377_v63 }
  0xd9   : > { %327 = vrot.lane.b32.xlu1 %v315_v38, %s1118_s30  ;;  %325 = vrot.lane.b32.xlu0 %v314_v39, %s1118_s30 }
 0x13f   : > { %v385_v2 = vpop.permute.xlu1 %384  ;;  %v383_v3 = vpop.permute.xlu0 %382 }
 0x140   : > { %v386_v6 = vsel %vm322_vm10, %v383_v3, %v385_v2  ;;  %v387_v7 = vsel %vm322_vm10, %v385_v2, %v383_v3 }
 0x143   : > { %v391_v4 = vpop.permute.xlu1 %390  ;;  %v389_v5 = vpop.permute.xlu0 %388 }
 0x144   : > { %v392_v8 = vsel %vm329_vm11, %v389_v5, %v391_v4  ;;  %v393_v9 = vsel %vm329_vm11, %v391_v4, %v389_v5 }
 0x145   : > { %v394_v10 = vsel %vm1336_vm12, %v392_v8, %v387_v7  ;;  %v395_v11 = vsel %vm1340_vm13, %v393_v9, %v386_v6  ;;  %v396_v12 = vsel %vm1350_vm14, %v387_v7, %v392_v8  ;;  %v397_v14 = vsel %vm1354_vm15, %v386_v6, %v393_v9 }
 0x146   : > { %398 = vst [vmem:[#allocation2 + $0x18] sm:$0xf] %v394_v10  ;;  %399 = vst [vmem:[#allocation2 + $0x10] sm:$0xf] %v395_v11 }
 0x147   : > { %408 = vst [vmem:[#allocation2 + $0x40] sm:$0xf] %v396_v12  ;;  %409 = vst [vmem:[#allocation2 + $0x28] sm:$0xf] %v397_v14  ;;  %v321_v15 = vpop.permute.xlu1 %320  ;;  %v319_v16 = vpop.permute.xlu0 %318 }
 0x148   : > { %v323_v19 = vsel %vm322_vm10, %v319_v16, %v321_v15  ;;  %v324_v20 = vsel %vm322_vm10, %v321_v15, %v319_v16 }
 0x14b   : > { %v328_v17 = vpop.permute.xlu1 %327  ;;  %v326_v18 = vpop.permute.xlu0 %325 }
 0x14c   : > { %v330_v21 = vsel %vm329_vm11, %v326_v18, %v328_v17  ;;  %v331_v26 = vsel %vm329_vm11, %v328_v17, %v326_v18 }
 0x14d   : > { %v332_v27 = vsel %vm1336_vm12, %v330_v21, %v324_v20  ;;  %v333_v28 = vsel %vm1340_vm13, %v331_v26, %v323_v19  ;;  %v334_v29 = vsel %vm1350_vm14, %v324_v20, %v330_v21  ;;  %v335_v30 = vsel %vm1354_vm15, %v323_v19, %v331_v26  ;;  %v414_v37 = vld [vmem:[#allocation2 + $0x10] sm:$0xff]  ;;  %v413_v38 = vld [vmem:[#allocation2 + $0x18] sm:$0xff] }
 0x14e   : > { %v420_v31 = vld [vmem:[#allocation2 + $0x28] sm:$0xf]  ;;  %v419_v32 = vld [vmem:[#allocation2 + $0x40] sm:$0xf]  ;;  %336 = vst [vmem:[#allocation2 + $0x20] sm:$0xf] %v332_v27 }
 0x14f   : > { %337 = vst [vmem:[#allocation2] sm:$0xf] %v333_v28  ;;  %346 = vst [vmem:[#allocation2 + $0x48] sm:$0xf] %v334_v29  ;;  %871 = vmatprep.subr.msk.mxu0 %vm425_vm0, %v420_v31 }
 0x150   : > { %347 = vst [vmem:[#allocation2 + $0x38] sm:$0xf] %v335_v30  ;;  %872 = vmatpush1.msk.msra.mxu0 %vm425_vm0, %v419_v32 }
 0x155   : > { %v411_v41 = vld [vmem:[#allocation2 + $0x20] sm:$0xff] }
 0x156   : > { %v417_v34 = vld [vmem:[#allocation2 + $0x48] sm:$0xff]  ;;  %v412_v39 = vld [vmem:[#allocation2] sm:$0xff] }
 0x157   : > { %v418_v33 = vld [vmem:[#allocation2 + $0x38] sm:$0xff] }
 0x158   : > { %456 = vmatprep.subr.mxu0 %v418_v33 }
 0x159   : > { %457 = vmatpush1.msra.mxu0 %v417_v34 }
 0x15a   : > { %458 = vmatprep.subr.mxu0 %v416_v35 }
 0x15b   : > { %459 = vmatpush1.msra.mxu0 %v415_v36 }
 0x15c   : > { %460 = vmatprep.subr.mxu0 %v414_v37 }
 0x15d   : > { %461 = vmatpush1.msra.mxu0 %v413_v38 }
 0x15e   : > { %462 = vmatprep.subr.mxu0 %v412_v39 }
 0x15f   : > { %463 = vmatpush1.msra.mxu0 %v411_v41 }
 0x160   : > { %873 = vmatmul.mubr.msk.f32.vlgmr.msra.gmra.mxu0 %vm421_vm1, %v410_v40 }
 0x220   : > { %v498_v42 = vpop.f32.mrf.mxu0 }
 0x221   : > { %v510_v43 = vmul.f32 %v498_v42, %v498_v42  ;;  %v503_v49 = vsel %vm425_vm0, %v498_v42, 0.0 }
 0x222   : > { %v500_v44 = vpop.f32.mrf.mxu0 }
 0x223   : > { %v504_v45 = vsel %vm425_vm0, %v500_v44, 0.0  ;;  %v511_v48 = vmul.f32 %v500_v44, %v500_v44  ;;  %v512_v53 = vsel %vm425_vm0, %v510_v43, 0.0 }
 0x224   : > { %v505_v52 = vadd.f32 %v504_v45, %v503_v49 }
 0x225   : > { %v513_v54 = vsel %vm425_vm0, %v511_v48, 0.0 }
 0x226   : > { %506 = vadd.xlane.f32.xlu0 %v505_v52  ;;  %v514_v55 = vadd.f32 %v513_v54, %v512_v53 }
 0x228   : > { %515 = vadd.xlane.f32.xlu1 %v514_v55 }
 0x2af   : > { %v507_v56 = vpop.xlane.xlu0 %506 }
 0x2b0   : > { %v509_v57 = vmul.f32 0.00390625, %v507_v56 }
 0x2b1   : > { %v516_v58 = vpop.xlane.xlu1 %515 }
 0x2b2   : > { %v517_v59 = vmul.f32 0.00390625, %v516_v58  ;;  %v518_v60 = vmul.f32 %v509_v57, %v509_v57  ;;  %v520_v63 = vsub.f32 %v498_v42, %v509_v57  ;;  %v521_v1 = vsub.f32 %v500_v44, %v509_v57 }
 0x2b4   : > { %v519_v61 = vsub.f32 %v517_v59, %v518_v60 }
 0x2b6   : > { %v522_v62 = vadd.f32 1e-05, %v519_v61 }
 0x2b8   : > { %958 = vrsqrt.f32 %v522_v62 }
 0x2c5   : > { %v959_v2 = vpop.eup %958 }
 0x2c6   : > { %v525_v3 = vmul.f32 %v959_v2, %v521_v1  ;;  %v524_v4 = vmul.f32 %v959_v2, %v520_v63 }
 0x2c8   : > { %v527_v5 = vmax.f32 %v525_v3, 0.0  ;;  %v526_v6 = vmax.f32 %v524_v4, 0.0 }
 0x2ca   : > { %530 = vrot.lane.b32.xlu1 %v527_v5, %s1116_s27  ;;  %597 = vst [vmem:[#allocation2 + $0x30] sm:$0xf] %v527_v5  ;;  %528 = vrot.lane.b32.xlu0 %v526_v6, %s1116_s27  ;;  %596 = vst [vmem:[#allocation2 + $0x8] sm:$0xf] %v526_v6 }
 0x2ce   : > { %536 = vrot.lane.b32.xlu1 %v527_v5, %s1115_s23  ;;  %534 = vrot.lane.b32.xlu0 %v526_v6, %s1115_s23 }
 0x2d2   : > { %574 = vrot.lane.b32.xlu1 %v527_v5, %s1117_s21  ;;  %572 = vrot.lane.b32.xlu0 %v526_v6, %s1117_s21 }
 0x2d6   : > { %580 = vrot.lane.b32.xlu1 %v527_v5, %s1118_s30  ;;  %578 = vrot.lane.b32.xlu0 %v526_v6, %s1118_s30 }
 0x33c   : > { %v531_v7 = vpop.permute.xlu1 %530  ;;  %v529_v8 = vpop.permute.xlu0 %528 }
 0x33d   : > { %v532_v11 = vsel %vm304_vm5, %v529_v8, %v531_v7  ;;  %v533_v12 = vsel %vm304_vm5, %v531_v7, %v529_v8 }
 0x340   : > { %v537_v9 = vpop.permute.xlu1 %536  ;;  %v535_v10 = vpop.permute.xlu0 %534 }
 0x341   : > { %v538_v14 = vsel %vm311_vm4, %v535_v10, %v537_v9  ;;  %v539_v15 = vsel %vm311_vm4, %v537_v9, %v535_v10  ;;  %v634_v9 = vld [vmem:[%s1544_s3] sm:$0xf] }
 0x342   : > { %v543_v16 = vsel %vm1300_vm6, %v532_v11, %v539_v15  ;;  %v542_v17 = vsel %vm1304_vm7, %v533_v12, %v538_v14  ;;  %v541_v18 = vsel %vm1308_vm8, %v539_v15, %v532_v11  ;;  %v540_v19 = vsel %vm1312_vm9, %v538_v14, %v533_v12 }
 0x343   : > { %608 = vrot.lane.b32.xlu1 %v543_v16, %s1117_s21  ;;  %v627_v20 = vrot.slane %v543_v16, 4  ;;  %606 = vrot.lane.b32.xlu0 %v542_v17, %s1117_s21  ;;  %v626_v21 = vrot.slane %v542_v17, 4  ;;  %v565_v26 = vrot.slane %v541_v18, 4  ;;  %v564_v27 = vrot.slane %v540_v19, 4 }
 0x344   : > { %v575_v28 = vpop.permute.xlu1 %574  ;;  %v573_v22 = vpop.permute.xlu0 %572 }
 0x345   : > { %631 = vst [vmem:[#allocation2 + $0x30] sm:$0xf0] %v627_v20  ;;  %630 = vst [vmem:[#allocation2 + $0x8] sm:$0xf0] %v626_v21  ;;  %v576_v25 = vsel %vm322_vm10, %v573_v22, %v575_v28  ;;  %v577_v29 = vsel %vm322_vm10, %v575_v28, %v573_v22 }
 0x346   : > { %569 = vst [vmem:[#allocation2 + $0x10] sm:$0xf0] %v565_v26  ;;  %568 = vst [vmem:[#allocation2 + $0x18] sm:$0xf0] %v564_v27 }
 0x347   : > { %614 = vrot.lane.b32.xlu1 %v543_v16, %s1118_s30  ;;  %612 = vrot.lane.b32.xlu0 %v542_v17, %s1118_s30 }
 0x348   : > { %v581_v23 = vpop.permute.xlu1 %580  ;;  %v579_v24 = vpop.permute.xlu0 %578 }
 0x349   : > { %v582_v30 = vsel %vm329_vm11, %v579_v24, %v581_v23  ;;  %v583_v31 = vsel %vm329_vm11, %v581_v23, %v579_v24 }
 0x34a   : > { %v584_v32 = vsel %vm1336_vm12, %v582_v30, %v577_v29  ;;  %v585_v33 = vsel %vm1340_vm13, %v583_v31, %v576_v25  ;;  %v586_v34 = vsel %vm1350_vm14, %v577_v29, %v582_v30  ;;  %v587_v35 = vsel %vm1354_vm15, %v576_v25, %v583_v31 }
 0x34b   : > { %v590_v36 = vrot.slane %v584_v32, 4  ;;  %v591_v37 = vrot.slane %v585_v33, 4  ;;  %v600_v38 = vrot.slane %v586_v34, 4  ;;  %v601_v39 = vrot.slane %v587_v35, 4  ;;  %546 = vrot.lane.b32.xlu1 %v541_v18, %s1117_s21  ;;  %544 = vrot.lane.b32.xlu0 %v540_v19, %s1117_s21 }
 0x34c   : > { %v640_v47 = vld [vmem:[#allocation2 + $0x30] sm:$0xff]  ;;  %v639_v50 = vld [vmem:[#allocation2 + $0x8] sm:$0xff] }
 0x34d   : > { %594 = vst [vmem:[#allocation2 + $0x20] sm:$0xf0] %v590_v36  ;;  %595 = vst [vmem:[#allocation2] sm:$0xf0] %v591_v37 }
 0x34e   : > { %604 = vst [vmem:[#allocation2 + $0x48] sm:$0xf0] %v600_v38  ;;  %605 = vst [vmem:[#allocation2 + $0x38] sm:$0xf0] %v601_v39 }
 0x34f   : > { %552 = vrot.lane.b32.xlu1 %v541_v18, %s1118_s30  ;;  %550 = vrot.lane.b32.xlu0 %v540_v19, %s1118_s30 }
 0x3b5   : > { %v609_v40 = vpop.permute.xlu1 %608  ;;  %v607_v41 = vpop.permute.xlu0 %606 }
 0x3b6   : > { %v610_v44 = vsel %vm322_vm10, %v607_v41, %v609_v40  ;;  %v611_v45 = vsel %vm322_vm10, %v609_v40, %v607_v41 }
 0x3b9   : > { %v615_v42 = vpop.permute.xlu1 %614  ;;  %v613_v43 = vpop.permute.xlu0 %612 }
 0x3ba   : > { %v616_v48 = vsel %vm329_vm11, %v613_v43, %v615_v42  ;;  %v617_v49 = vsel %vm329_vm11, %v615_v42, %v613_v43 }
 0x3bb   : > { %v618_v52 = vsel %vm1336_vm12, %v616_v48, %v611_v45  ;;  %v619_v53 = vsel %vm1340_vm13, %v617_v49, %v610_v44  ;;  %v620_v54 = vsel %vm1350_vm14, %v611_v45, %v616_v48  ;;  %v621_v55 = vsel %vm1354_vm15, %v610_v44, %v617_v49 }
 0x3bc   : > { %622 = vst [vmem:[#allocation2 + $0x18] sm:$0xf] %v618_v52  ;;  %623 = vst [vmem:[#allocation2 + $0x10] sm:$0xf] %v619_v53 }
 0x3bd   : > { %632 = vst [vmem:[#allocation2 + $0x40] sm:$0xf] %v620_v54  ;;  %633 = vst [vmem:[#allocation2 + $0x28] sm:$0xf] %v621_v55  ;;  %v547_v56 = vpop.permute.xlu1 %546  ;;  %v545_v57 = vpop.permute.xlu0 %544 }
 0x3be   : > { %v548_v60 = vsel %vm322_vm10, %v545_v57, %v547_v56  ;;  %v549_v61 = vsel %vm322_vm10, %v547_v56, %v545_v57 }
 0x3c1   : > { %v553_v58 = vpop.permute.xlu1 %552  ;;  %v551_v59 = vpop.permute.xlu0 %550 }
 0x3c2   : > { %v554_v62 = vsel %vm329_vm11, %v551_v59, %v553_v58  ;;  %v555_v63 = vsel %vm329_vm11, %v553_v58, %v551_v59 }
 0x3c3   : > { %v556_v1 = vsel %vm1336_vm12, %v554_v62, %v549_v61  ;;  %v557_v2 = vsel %vm1340_vm13, %v555_v63, %v548_v60  ;;  %v558_v3 = vsel %vm1350_vm14, %v549_v61, %v554_v62  ;;  %v559_v4 = vsel %vm1354_vm15, %v548_v60, %v555_v63  ;;  %v638_v51 = vld [vmem:[#allocation2 + $0x10] sm:$0xff]  ;;  %v637_v7 = vld [vmem:[#allocation2 + $0x18] sm:$0xff] }
 0x3c4   : > { %v644_v5 = vld [vmem:[#allocation2 + $0x28] sm:$0xf]  ;;  %v643_v6 = vld [vmem:[#allocation2 + $0x40] sm:$0xf]  ;;  %560 = vst [vmem:[#allocation2 + $0x20] sm:$0xf] %v556_v1 }
 0x3c5   : > { %561 = vst [vmem:[#allocation2] sm:$0xf] %v557_v2  ;;  %570 = vst [vmem:[#allocation2 + $0x48] sm:$0xf] %v558_v3  ;;  %874 = vmatprep.subr.msk.mxu1 %vm425_vm0, %v644_v5 }
 0x3c6   : > { %571 = vst [vmem:[#allocation2 + $0x38] sm:$0xf] %v559_v4  ;;  %875 = vmatpush1.msk.msra.mxu1 %vm425_vm0, %v643_v6 }
 0x3cb   : > { %v635_v10 = vld [vmem:[#allocation2 + $0x20] sm:$0xff] }
 0x3cc   : > { %v641_v46 = vld [vmem:[#allocation2 + $0x48] sm:$0xff]  ;;  %v636_v8 = vld [vmem:[#allocation2] sm:$0xff] }
 0x3cd   : > { %v642_v13 = vld [vmem:[#allocation2 + $0x38] sm:$0xff] }
 0x3ce   : > { %678 = vmatprep.subr.mxu1 %v642_v13 }
 0x3cf   : > { %679 = vmatpush1.msra.mxu1 %v641_v46 }
 0x3d0   : > { %680 = vmatprep.subr.mxu1 %v640_v47 }
 0x3d1   : > { %681 = vmatpush1.msra.mxu1 %v639_v50 }
 0x3d2   : > { %682 = vmatprep.subr.mxu1 %v638_v51 }
 0x3d3   : > { %683 = vmatpush1.msra.mxu1 %v637_v7 }
 0x3d4   : > { %684 = vmatprep.subr.mxu1 %v636_v8 }
 0x3d5   : > { %685 = vmatpush1.msra.mxu1 %v635_v10 }
 0x3d6   : > { %876 = vmatmul.mubr.msk.f32.vlgmr.msra.gmra.mxu1 %vm421_vm1, %v634_v9 }
 0x496   : > { %v720_v11 = vpop.f32.mrf.mxu1 }
 0x497   : > { %v731_v12 = vmul.f32 %v720_v11, %v720_v11  ;;  %v725_v17 = vsel %vm425_vm0, %v720_v11, 0.0 }
 0x498   : > { %v722_v14 = vpop.f32.mrf.mxu1 }
 0x499   : > { %v726_v15 = vsel %vm425_vm0, %v722_v14, 0.0  ;;  %v732_v16 = vmul.f32 %v722_v14, %v722_v14  ;;  %v733_v19 = vsel %vm425_vm0, %v731_v12, 0.0 }
 0x49a   : > { %v727_v18 = vadd.f32 %v726_v15, %v725_v17 }
 0x49b   : > { %v734_v20 = vsel %vm425_vm0, %v732_v16, 0.0 }
 0x49c   : > { %728 = vadd.xlane.f32.xlu0 %v727_v18  ;;  %v735_v21 = vadd.f32 %v734_v20, %v733_v19 }
 0x49e   : > { %736 = vadd.xlane.f32.xlu1 %v735_v21 }
 0x525   : > { %v729_v26 = vpop.xlane.xlu0 %728 }
 0x526   : > { %v730_v27 = vmul.f32 0.00390625, %v729_v26 }
 0x527   : > { %v737_v28 = vpop.xlane.xlu1 %736 }
 0x528   : > { %v738_v22 = vmul.f32 0.00390625, %v737_v28  ;;  %v739_v23 = vmul.f32 %v730_v27, %v730_v27  ;;  %v741_v29 = vsub.f32 %v720_v11, %v730_v27  ;;  %v742_v30 = vsub.f32 %v722_v14, %v730_v27 }
 0x52a   : > { %v740_v24 = vsub.f32 %v738_v22, %v739_v23 }
 0x52c   : > { %v743_v25 = vadd.f32 1e-05, %v740_v24 }
 0x52e   : > { %960 = vrsqrt.f32 %v743_v25 }
 0x53b   : > { %v961_v31 = vpop.eup %960 }
 0x53c   : > { %v745_v32 = vmul.f32 %v961_v31, %v741_v29  ;;  %v746_v33 = vmul.f32 %v961_v31, %v742_v30 }
 0x53e   : > { %v750_v34 = vcombine.low %v745_v32, %v746_v33 }
 0x540   : > { %v752_v35 = vadd.f32 %v750_v34, %v1279_v0 }
 0x542   : > { %753 = vst [vmem:[%s238_s11] sm:$0xff] %v752_v35 }
 0x543   : > { %1055 = shalt.err (!%p1052_p12)
}
 0x544   : > { %s1056_s23 = scalar_lea.hbm %s767_s25, 128  ;;  %s1060_s21 = scalar_lea.hbm %s1545_s4, 256 }
 0x545   : > { %p1057_p3 = scmp.ne.s32.totalorder %s767_s25, %s1056_s23  ;;  %p1061_p5 = scmp.lt.s32.totalorder %s767_s25, %s1545_s4 }
 0x546   : > { %p1062_p9 = scmp.lt.s32.totalorder %s1060_s21, %s1056_s23 }
 0x547   : > { %p1058_p7 = pnand %p1057_p3, %p1577_p0 }
 0x548   : > { %p1063_p11 = por %p1062_p9, %p1061_p5 }
 0x549   : > { %p1059_p10 = pneg %p1058_p7 }
 0x54b   : > { %p1064_p13 = pnand %p1063_p11, %p1059_p10 }
 0x54d   : > { %1067 = shalt.err (!%p1064_p13)
}
 0x54e   : > { %894 = dma.vmem_to_hbm [thread:$0]  (%p1577_p0), %s770_s20, 128, %s767_s25, %s755_s26  }
 0x54f PF: > { %s781_s6 = sand.u32 1, %s1098_s15   ;;  %p1578_p1 = scmp.ne.s32.totalorder %s1551_s22, 0 }
 0x550   : > { %p1579_p2 = scmp.ge.s32.totalorder %s1110_s18, 2  ;;  %s782_s10 = scalar_lea.sflag [#allocation5], %s781_s6 }
 0x552   : > { %p908_p4 = pnand %p1579_p2, %p1578_p1 }
 0x554   : > { %p909_p6 = pneg %p908_p4 }
 0x556   : > { %1093 = dma.done.wait (%p909_p6), %s782_s10, 128  }
 0x557   : > { %1095 = vsyncadd (%p909_p6), %s782_s10, 4294967168  ;;  %p18_p8 = scmp.ge.s32.totalorder %s1201_s29, 4   ;;  %s1580_s15 = smov %s1102_s16 }
 0x558   : > { %s1581_s16 = smov %s1106_s17  ;;  %s1582_s17 = smov %s1228_s12 }
 0x559   : > { %s1583_s18 = smov %s1201_s29  ;;  %20 = sbr.rel (!%p18_p8) target bundleno = 6 (0x6), region = 92 }
 0x55e   :  { %787 = vsyncpa [#allocation4], 1 }
 0x55f   :  { %789 = vsyncpa [#allocation4 + $0x1], 1 }
 0x560   :  { %790 = vsyncpa [#allocation7], 1 }
 0x561   :  { %791 = vsyncpa [#allocation5], 1 }
 0x562   :  { %793 = vsyncpa [#allocation5 + $0x1], 1 }

</bundles_post_ra>
